<compile_context>
chip_gen: v7x
topology: tpu7x:2x2x1
jax: 0.10.0
libtpu: 0.0.40
codegen_flags: <defaults>
</compile_context>

<pallas_src>
import functools

import jax
import jax.numpy as jnp
from jax.experimental import pallas as pl
from jax.experimental.pallas import tpu as pltpu

LANE = 128
DEFAULT_BLOCK_ROWS = 2048      # v5e/v6e sweet spot
V7X_BLOCK_ROWS = 8192          # bigger steps pay off at 3.2 TB/s HBM


def _cdiv(a, b):
    return (a + b - 1) // b


def _device_kind():
    try:
        return jax.devices()[0].device_kind.lower()
    except Exception:
        return ""


def _bcl_kernel(d_ref, l_ref, out_ref, *, margin, full_rows, rem_lanes,
                block_rows):
    c = pl.program_id(0)                 # core split (parallel)
    i = pl.program_id(1)                 # row blocks (arbitrary / reduction)
    n_inner = pl.num_programs(1)

    @pl.when(i == 0)
    def _init():
        out_ref[...] = jnp.zeros_like(out_ref)

    # Stream native dtypes; cast once in-kernel (free: VPU slack on v5e/v6e).
    d = d_ref[...].astype(jnp.float32)           # (block_rows, LANE)
    lab = l_ref[...].astype(jnp.float32)

    is_neg = lab == 1.0        # original 1  -> remapped -1 (change)
    is_pos = lab == 0.0        # original 0  -> remapped +1 (no-change)
    is_ign = lab == 255.0      # ignore label (PyTorch 255 quirk preserved)

    # General remap so arbitrary label values match the PyTorch forward.
    rl = jnp.where(is_neg, -1.0, jnp.where(is_pos, 1.0, lab))
    dm = jnp.where(is_ign, 0.0, d)               # distance * (label != 255)

    pos = is_pos.astype(jnp.float32)             # reuse remap compares
    neg = is_neg.astype(jnp.float32)
    w1 = (rl + 1.0) * 0.5                        # (1 + label) / 2
    clamp = jnp.maximum(margin - dm, 0.0)
    t1 = w1 * (dm * dm)
    t2 = (1.0 - w1) * (clamp * clamp)            # (1 - label)/2 * clamp^2

    def accumulate(streams):
        for idx, v in enumerate(streams):
            # (block_rows, LANE) -> (8, LANE): sublane-group sums, VALU only.
            out_ref[0, idx] += jnp.sum(
                v.reshape(block_rows // 8, 8, LANE), axis=0)

    start_row = (c * n_inner + i) * block_rows
    block_is_full = start_row + block_rows <= full_rows

    @pl.when(block_is_full)
    def _full_block():                            # no padding/garbage here
        accumulate((pos, neg, t1, t2))

    @pl.when(jnp.logical_not(block_is_full))
    def _tail_block():
        # Edge/over-covered blocks may contain undefined data (Inf/NaN); use
        # selects, never multiplies, so garbage cannot poison the accumulator.
        row = start_row + jax.lax.broadcasted_iota(
            jnp.int32, (block_rows, LANE), 0)
        lane = jax.lax.broadcasted_iota(jnp.int32, (block_rows, LANE), 1)
        valid = jnp.logical_or(
            row < full_rows,
            jnp.logical_and(row == full_rows, lane < rem_lanes))
        zero = jnp.zeros_like(d)
        accumulate((jnp.where(valid, pos, zero),
                    jnp.where(valid, neg, zero),
                    jnp.where(valid, t1, zero),
                    jnp.where(valid, t2, zero)))


def bcl_loss(distance, label, margin=2.0, block_rows=None, num_splits=None):
    kind = _device_kind()
    is_v7 = "v7" in kind
    if block_rows is None:
        block_rows = V7X_BLOCK_ROWS if is_v7 else DEFAULT_BLOCK_ROWS
    if num_splits is None:
        num_splits = 2 if is_v7 else 1           # single TC on v5e/v6e

    n = int(distance.size)
    full_rows, rem_lanes = divmod(n, LANE)
    rows_ceil = _cdiv(n, LANE)

    # Fast path (typical: numel is a multiple of 128 and not tiny): pure
    # reshape, zero extra HBM traffic.  Otherwise pad only up to a lane
    # multiple / 32 rows (tiny or rare), masked in-kernel.
    rows = max(rows_ceil, 32)
    pad = rows * LANE - n
    if pad == 0:
        d2 = jnp.reshape(distance, (rows, LANE))
        l2 = jnp.reshape(label, (rows, LANE))
    else:
        d2 = jnp.pad(jnp.reshape(distance, (-1,)), (0, pad)).reshape(rows, LANE)
        l2 = jnp.pad(jnp.reshape(label, (-1,)), (0, pad)).reshape(rows, LANE)

    # Block rows: multiple of 32 (packs any dtype), never larger than the
    # array, shared across the core splits.
    br = max(32, min(block_rows, (rows // num_splits) // 32 * 32))
    total_blocks = _cdiv(rows, br)
    inner = _cdiv(total_blocks, num_splits)
    last_block = total_blocks - 1

    if num_splits * inner == total_blocks:
        in_idx = lambda c, i: (c * inner + i, 0)
    else:
        # Over-covered blocks: clamp the DMA in-bounds; the kernel masks them
        # to zero based on program ids, so duplicates contribute nothing.
        in_idx = lambda c, i: (jnp.minimum(c * inner + i, last_block), 0)

    kernel = functools.partial(
        _bcl_kernel, margin=float(margin), full_rows=full_rows,
        rem_lanes=rem_lanes, block_rows=br)

    bytes_accessed = (d2.size * d2.dtype.itemsize
                      + l2.size * l2.dtype.itemsize
                      + num_splits * 4 * 8 * LANE * 4)

    partials = pl.pallas_call(
        kernel,
        out_shape=jax.ShapeDtypeStruct((num_splits, 4, 8, LANE), jnp.float32),
        grid_spec=pltpu.PrefetchScalarGridSpec(
            num_scalar_prefetch=0,
            grid=(num_splits, inner),
            in_specs=[
                pl.BlockSpec((br, LANE), in_idx),
                pl.BlockSpec((br, LANE), in_idx),
            ],
            out_specs=pl.BlockSpec((1, 4, 8, LANE), lambda c, i: (c, 0, 0, 0)),
        ),
        compiler_params=pltpu.CompilerParams(
            dimension_semantics=("parallel", "arbitrary")),
        cost_estimate=pl.CostEstimate(flops=20 * n, transcendentals=0,
                                      bytes_accessed=int(bytes_accessed)),
    )(d2, l2)

    sums = jnp.sum(partials, axis=(0, 2, 3))     # (4,) : pos, neg, t1, t2
    pos_num = sums[0] + 0.0001
    neg_num = sums[1] + 0.0001
    return sums[2] / pos_num + sums[3] / neg_num


def bcl_loss_ref(distance, label, margin=2.0):
    """Pure-JAX reference mirroring the PyTorch forward."""
    lab = label.astype(jnp.float32)
    lab = jnp.where(lab == 1.0, -1.0, jnp.where(lab == 0.0, 1.0, lab))
    mask = (lab != 255.0).astype(jnp.float32)
    d = distance.astype(jnp.float32) * mask
    pos_num = jnp.sum((lab == 1.0).astype(jnp.float32)) + 0.0001
    neg_num = jnp.sum((lab == -1.0).astype(jnp.float32)) + 0.0001
    loss_1 = jnp.sum((1.0 + lab) / 2.0 * d * d) / pos_num
    loss_2 = jnp.sum(
        (1.0 - lab) / 2.0 * jnp.square(jnp.maximum(margin - d, 0.0))
    ) / neg_num
    return loss_1 + loss_2


if __name__ == "__main__":
    key = jax.random.PRNGKey(0)
    k1, k2, k3, k4, k5, k6 = jax.random.split(key, 6)

    # Case 1: small NCHW change-detection map (demo shape).
    d1 = jax.random.uniform(k1, (2, 4, 16, 16), jnp.float32) * 3.0
    l1 = jax.random.bernoulli(k2, 0.3, (2, 4, 16, 16)).astype(jnp.float32)

    # Case 2: exercises the zero-copy fast path + a partial edge row-block.
    d2 = jax.random.uniform(k3, (2, 1, 80, 80), jnp.float32) * 3.0
    l2 = jax.random.bernoulli(k4, 0.3, (2, 1, 80, 80)).astype(jnp.float32)

    # Case 3: ragged numel (not a multiple of 128) + 255 ignore labels.
    d3 = jax.random.uniform(k5, (3, 5, 7, 11), jnp.float32) * 3.0
    l3 = jax.random.bernoulli(k6, 0.3, (3, 5, 7, 11)).astype(jnp.float32)
    l3 = l3.at[0, 0, :2, :].set(255.0)

    for dist, lab in ((d1, l1), (d2, l2), (d3, l3)):
        out = jax.block_until_ready(bcl_loss(dist, lab, margin=2.0))
        ref = bcl_loss_ref(dist, lab, margin=2.0)
        assert jnp.allclose(out, ref, rtol=1e-5, atol=1e-5), (dist.shape, out, ref)

    print("KERNEL_OK")
</pallas_src>

<mosaic_0001>
module attributes {stable_mosaic.version = 11 : i64} {
  func.func @_bcl_kernel(%arg0: i32, %arg1: i32, %arg2: memref<32x128xf32, #tpu.memory_space<vmem>>, %arg3: memref<32x128xf32, #tpu.memory_space<vmem>>, %arg4: memref<1x4x8x128xf32, #tpu.memory_space<vmem>>) attributes {dimension_semantics = [#tpu.dimension_semantics<parallel>, #tpu.dimension_semantics<arbitrary>], iteration_bounds = array<i64: 1, 1>, scalar_prefetch = 0 : i64, scratch_operands = 0 : i64, tpu.core_type = #tpu.core_type<tc>, window_params = [{transform_indices = @transform_0, window_bounds = array<i64: 32, 128>}, {transform_indices = @transform_1, window_bounds = array<i64: 32, 128>}, {transform_indices = @transform_2, window_bounds = array<i64: 1, 4, 8, 128>}]} {
    %c0_i32 = arith.constant 0 : i32
    %0 = arith.cmpi eq, %arg1, %c0_i32 : i32
    %1 = arith.extui %0 : i1 to i32
    %c0_i32_0 = arith.constant 0 : i32
    %2 = arith.cmpi ne, %1, %c0_i32_0 : i32
    scf.if %2 {
      %cst_17 = arith.constant 0.000000e+00 : f32
      %45 = vector.broadcast %cst_17 : f32 to vector<1x4x8x128xf32>
      %c0_18 = arith.constant 0 : index
      %c0_19 = arith.constant 0 : index
      %c0_20 = arith.constant 0 : index
      %c0_21 = arith.constant 0 : index
      %46 = vector.load %arg4[%c0_18, %c0_19, %c0_20, %c0_21] : memref<1x4x8x128xf32, #tpu.memory_space<vmem>>, vector<1x4x8x128xf32>
      tpu.vector_store %arg4[%c0_18, %c0_19, %c0_20, %c0_21], %45 {strides = array<i32>} : memref<1x4x8x128xf32, #tpu.memory_space<vmem>>, vector<1x4x8x128xf32>,
    } else {
    }
    %c0 = arith.constant 0 : index
    %c0_1 = arith.constant 0 : index
    %3 = vector.load %arg2[%c0, %c0_1] : memref<32x128xf32, #tpu.memory_space<vmem>>, vector<32x128xf32>
    %c0_2 = arith.constant 0 : index
    %c0_3 = arith.constant 0 : index
    %4 = vector.load %arg3[%c0_2, %c0_3] : memref<32x128xf32, #tpu.memory_space<vmem>>, vector<32x128xf32>
    %cst = arith.constant 1.000000e+00 : f32
    %5 = vector.broadcast %cst : f32 to vector<32x128xf32>
    %6 = arith.cmpf oeq, %4, %5 : vector<32x128xf32>
    %cst_4 = arith.constant 0.000000e+00 : f32
    %7 = vector.broadcast %cst_4 : f32 to vector<32x128xf32>
    %8 = arith.cmpf oeq, %4, %7 : vector<32x128xf32>
    %cst_5 = arith.constant 2.550000e+02 : f32
    %9 = vector.broadcast %cst_5 : f32 to vector<32x128xf32>
    %10 = arith.cmpf oeq, %4, %9 : vector<32x128xf32>
    %cst_6 = arith.constant 1.000000e+00 : f32
    %11 = vector.broadcast %cst_6 : f32 to vector<32x128xf32>
    %12 = arith.select %8, %11, %4 : vector<32x128xi1>, vector<32x128xf32>
    %cst_7 = arith.constant -1.000000e+00 : f32
    %13 = vector.broadcast %cst_7 : f32 to vector<32x128xf32>
    %14 = arith.select %6, %13, %12 : vector<32x128xi1>, vector<32x128xf32>
    %cst_8 = arith.constant 0.000000e+00 : f32
    %15 = vector.broadcast %cst_8 : f32 to vector<32x128xf32>
    %16 = arith.select %10, %15, %3 : vector<32x128xi1>, vector<32x128xf32>
    %17 = arith.extui %8 : vector<32x128xi1> to vector<32x128xi32>
    %18 = arith.sitofp %17 : vector<32x128xi32> to vector<32x128xf32>
    %19 = arith.extui %6 : vector<32x128xi1> to vector<32x128xi32>
    %20 = arith.sitofp %19 : vector<32x128xi32> to vector<32x128xf32>
    %cst_9 = arith.constant 1.000000e+00 : f32
    %21 = vector.broadcast %cst_9 : f32 to vector<32x128xf32>
    %22 = arith.addf %14, %21 : vector<32x128xf32>
    %cst_10 = arith.constant 5.000000e-01 : f32
    %23 = vector.broadcast %cst_10 : f32 to vector<32x128xf32>
    %24 = arith.mulf %22, %23 : vector<32x128xf32>
    %cst_11 = arith.constant 2.000000e+00 : f32
    %25 = vector.broadcast %cst_11 : f32 to vector<32x128xf32>
    %26 = arith.subf %25, %16 : vector<32x128xf32>
    %cst_12 = arith.constant 0.000000e+00 : f32
    %27 = vector.broadcast %cst_12 : f32 to vector<32x128xf32>
    %28 = arith.maximumf %26, %27 : vector<32x128xf32>
    %29 = arith.mulf %16, %16 : vector<32x128xf32>
    %30 = arith.mulf %24, %29 : vector<32x128xf32>
    %cst_13 = arith.constant 1.000000e+00 : f32
    %31 = vector.broadcast %cst_13 : f32 to vector<32x128xf32>
    %32 = arith.subf %31, %24 : vector<32x128xf32>
    %33 = arith.mulf %28, %28 : vector<32x128xf32>
    %34 = arith.mulf %32, %33 : vector<32x128xf32>
    %c1_i32 = arith.constant 1 : i32
    %35 = arith.muli %arg0, %c1_i32 : i32
    %36 = arith.addi %35, %arg1 : i32
    %c32_i32 = arith.constant 32 : i32
    %37 = arith.muli %36, %c32_i32 : i32
    %c32_i32_14 = arith.constant 32 : i32
    %38 = arith.addi %37, %c32_i32_14 : i32
    %c16_i32 = arith.constant 16 : i32
    %39 = arith.cmpi sle, %38, %c16_i32 : i32
    %40 = arith.extui %39 : i1 to i32
    %c0_i32_15 = arith.constant 0 : i32
    %41 = arith.cmpi ne, %40, %c0_i32_15 : i32
    scf.if %41 {
      %c0_17 = arith.constant 0 : index
      %c0_18 = arith.constant 0 : index
      %c0_19 = arith.constant 0 : index
      %c0_20 = arith.constant 0 : index
      %45 = vector.load %arg4[%c0_17, %c0_18, %c0_19, %c0_20] : memref<1x4x8x128xf32, #tpu.memory_space<vmem>>, vector<1x1x8x128xf32>
      %46 = vector.shape_cast %45 : vector<1x1x8x128xf32> to vector<8x128xf32>
      %47 = vector.shape_cast %18 : vector<32x128xf32> to vector<4x8x128xf32>
      %cst_21 = arith.constant dense<0.000000e+00> : vector<8x128xf32>
      %48 = vector.multi_reduction <add>, %47, %cst_21 [0] : vector<4x8x128xf32> to vector<8x128xf32>
      %49 = arith.addf %46, %48 : vector<8x128xf32>
      %c0_22 = arith.constant 0 : index
      %c0_23 = arith.constant 0 : index
      %c0_24 = arith.constant 0 : index
      %c0_25 = arith.constant 0 : index
      %50 = vector.load %arg4[%c0_22, %c0_23, %c0_24, %c0_25] : memref<1x4x8x128xf32, #tpu.memory_space<vmem>>, vector<1x1x8x128xf32>
      %51 = vector.shape_cast %50 : vector<1x1x8x128xf32> to vector<8x128xf32>
      %52 = vector.shape_cast %49 : vector<8x128xf32> to vector<1x1x8x128xf32>
      tpu.vector_store %arg4[%c0_22, %c0_23, %c0_24, %c0_25], %52 {strides = array<i32>} : memref<1x4x8x128xf32, #tpu.memory_space<vmem>>, vector<1x1x8x128xf32>,
      %c0_26 = arith.constant 0 : index
      %c1 = arith.constant 1 : index
      %c0_27 = arith.constant 0 : index
      %c0_28 = arith.constant 0 : index
      %53 = vector.load %arg4[%c0_26, %c1, %c0_27, %c0_28] : memref<1x4x8x128xf32, #tpu.memory_space<vmem>>, vector<1x1x8x128xf32>
      %54 = vector.shape_cast %53 : vector<1x1x8x128xf32> to vector<8x128xf32>
      %55 = vector.shape_cast %20 : vector<32x128xf32> to vector<4x8x128xf32>
      %cst_29 = arith.constant dense<0.000000e+00> : vector<8x128xf32>
      %56 = vector.multi_reduction <add>, %55, %cst_29 [0] : vector<4x8x128xf32> to vector<8x128xf32>
      %57 = arith.addf %54, %56 : vector<8x128xf32>
      %c0_30 = arith.constant 0 : index
      %c1_31 = arith.constant 1 : index
      %c0_32 = arith.constant 0 : index
      %c0_33 = arith.constant 0 : index
      %58 = vector.load %arg4[%c0_30, %c1_31, %c0_32, %c0_33] : memref<1x4x8x128xf32, #tpu.memory_space<vmem>>, vector<1x1x8x128xf32>
      %59 = vector.shape_cast %58 : vector<1x1x8x128xf32> to vector<8x128xf32>
      %60 = vector.shape_cast %57 : vector<8x128xf32> to vector<1x1x8x128xf32>
      tpu.vector_store %arg4[%c0_30, %c1_31, %c0_32, %c0_33], %60 {strides = array<i32>} : memref<1x4x8x128xf32, #tpu.memory_space<vmem>>, vector<1x1x8x128xf32>,
      %c0_34 = arith.constant 0 : index
      %c2 = arith.constant 2 : index
      %c0_35 = arith.constant 0 : index
      %c0_36 = arith.constant 0 : index
      %61 = vector.load %arg4[%c0_34, %c2, %c0_35, %c0_36] : memref<1x4x8x128xf32, #tpu.memory_space<vmem>>, vector<1x1x8x128xf32>
      %62 = vector.shape_cast %61 : vector<1x1x8x128xf32> to vector<8x128xf32>
      %63 = vector.shape_cast %30 : vector<32x128xf32> to vector<4x8x128xf32>
      %cst_37 = arith.constant dense<0.000000e+00> : vector<8x128xf32>
      %64 = vector.multi_reduction <add>, %63, %cst_37 [0] : vector<4x8x128xf32> to vector<8x128xf32>
      %65 = arith.addf %62, %64 : vector<8x128xf32>
      %c0_38 = arith.constant 0 : index
      %c2_39 = arith.constant 2 : index
      %c0_40 = arith.constant 0 : index
      %c0_41 = arith.constant 0 : index
      %66 = vector.load %arg4[%c0_38, %c2_39, %c0_40, %c0_41] : memref<1x4x8x128xf32, #tpu.memory_space<vmem>>, vector<1x1x8x128xf32>
      %67 = vector.shape_cast %66 : vector<1x1x8x128xf32> to vector<8x128xf32>
      %68 = vector.shape_cast %65 : vector<8x128xf32> to vector<1x1x8x128xf32>
      tpu.vector_store %arg4[%c0_38, %c2_39, %c0_40, %c0_41], %68 {strides = array<i32>} : memref<1x4x8x128xf32, #tpu.memory_space<vmem>>, vector<1x1x8x128xf32>,
      %c0_42 = arith.constant 0 : index
      %c3 = arith.constant 3 : index
      %c0_43 = arith.constant 0 : index
      %c0_44 = arith.constant 0 : index
      %69 = vector.load %arg4[%c0_42, %c3, %c0_43, %c0_44] : memref<1x4x8x128xf32, #tpu.memory_space<vmem>>, vector<1x1x8x128xf32>
      %70 = vector.shape_cast %69 : vector<1x1x8x128xf32> to vector<8x128xf32>
      %71 = vector.shape_cast %34 : vector<32x128xf32> to vector<4x8x128xf32>
      %cst_45 = arith.constant dense<0.000000e+00> : vector<8x128xf32>
      %72 = vector.multi_reduction <add>, %71, %cst_45 [0] : vector<4x8x128xf32> to vector<8x128xf32>
      %73 = arith.addf %70, %72 : vector<8x128xf32>
      %c0_46 = arith.constant 0 : index
      %c3_47 = arith.constant 3 : index
      %c0_48 = arith.constant 0 : index
      %c0_49 = arith.constant 0 : index
      %74 = vector.load %arg4[%c0_46, %c3_47, %c0_48, %c0_49] : memref<1x4x8x128xf32, #tpu.memory_space<vmem>>, vector<1x1x8x128xf32>
      %75 = vector.shape_cast %74 : vector<1x1x8x128xf32> to vector<8x128xf32>
      %76 = vector.shape_cast %73 : vector<8x128xf32> to vector<1x1x8x128xf32>
      tpu.vector_store %arg4[%c0_46, %c3_47, %c0_48, %c0_49], %76 {strides = array<i32>} : memref<1x4x8x128xf32, #tpu.memory_space<vmem>>, vector<1x1x8x128xf32>,
    } else {
    }
    %true = arith.constant true
    %42 = arith.xori %39, %true : i1
    %43 = arith.extui %42 : i1 to i32
    %c0_i32_16 = arith.constant 0 : i32
    %44 = arith.cmpi ne, %43, %c0_i32_16 : i32
    scf.if %44 {
      %45 = tpu.iota {dimensions = array<i32: 0>} : vector<32x128xi32>
      %46 = vector.broadcast %37 : i32 to vector<32x128xi32>
      %47 = arith.addi %46, %45 : vector<32x128xi32>
      %48 = tpu.iota {dimensions = array<i32: 1>} : vector<32x128xi32>
      %c16_i32_17 = arith.constant 16 : i32
      %49 = vector.broadcast %c16_i32_17 : i32 to vector<32x128xi32>
      %50 = arith.cmpi slt, %47, %49 : vector<32x128xi32>
      %c16_i32_18 = arith.constant 16 : i32
      %51 = vector.broadcast %c16_i32_18 : i32 to vector<32x128xi32>
      %52 = arith.cmpi eq, %47, %51 : vector<32x128xi32>
      %c0_i32_19 = arith.constant 0 : i32
      %53 = vector.broadcast %c0_i32_19 : i32 to vector<32x128xi32>
      %54 = arith.cmpi slt, %48, %53 : vector<32x128xi32>
      %55 = arith.andi %52, %54 : vector<32x128xi1>
      %56 = arith.ori %50, %55 : vector<32x128xi1>
      %cst_20 = arith.constant 0.000000e+00 : f32
      %57 = vector.broadcast %cst_20 : f32 to vector<32x128xf32>
      %58 = arith.select %56, %18, %57 : vector<32x128xi1>, vector<32x128xf32>
      %59 = arith.select %56, %20, %57 : vector<32x128xi1>, vector<32x128xf32>
      %60 = arith.select %56, %30, %57 : vector<32x128xi1>, vector<32x128xf32>
      %61 = arith.select %56, %34, %57 : vector<32x128xi1>, vector<32x128xf32>
      %c0_21 = arith.constant 0 : index
      %c0_22 = arith.constant 0 : index
      %c0_23 = arith.constant 0 : index
      %c0_24 = arith.constant 0 : index
      %62 = vector.load %arg4[%c0_21, %c0_22, %c0_23, %c0_24] : memref<1x4x8x128xf32, #tpu.memory_space<vmem>>, vector<1x1x8x128xf32>
      %63 = vector.shape_cast %62 : vector<1x1x8x128xf32> to vector<8x128xf32>
      %64 = vector.shape_cast %58 : vector<32x128xf32> to vector<4x8x128xf32>
      %cst_25 = arith.constant dense<0.000000e+00> : vector<8x128xf32>
      %65 = vector.multi_reduction <add>, %64, %cst_25 [0] : vector<4x8x128xf32> to vector<8x128xf32>
      %66 = arith.addf %63, %65 : vector<8x128xf32>
      %c0_26 = arith.constant 0 : index
      %c0_27 = arith.constant 0 : index
      %c0_28 = arith.constant 0 : index
      %c0_29 = arith.constant 0 : index
      %67 = vector.load %arg4[%c0_26, %c0_27, %c0_28, %c0_29] : memref<1x4x8x128xf32, #tpu.memory_space<vmem>>, vector<1x1x8x128xf32>
      %68 = vector.shape_cast %67 : vector<1x1x8x128xf32> to vector<8x128xf32>
      %69 = vector.shape_cast %66 : vector<8x128xf32> to vector<1x1x8x128xf32>
      tpu.vector_store %arg4[%c0_26, %c0_27, %c0_28, %c0_29], %69 {strides = array<i32>} : memref<1x4x8x128xf32, #tpu.memory_space<vmem>>, vector<1x1x8x128xf32>,
      %c0_30 = arith.constant 0 : index
      %c1 = arith.constant 1 : index
      %c0_31 = arith.constant 0 : index
      %c0_32 = arith.constant 0 : index
      %70 = vector.load %arg4[%c0_30, %c1, %c0_31, %c0_32] : memref<1x4x8x128xf32, #tpu.memory_space<vmem>>, vector<1x1x8x128xf32>
      %71 = vector.shape_cast %70 : vector<1x1x8x128xf32> to vector<8x128xf32>
      %72 = vector.shape_cast %59 : vector<32x128xf32> to vector<4x8x128xf32>
      %cst_33 = arith.constant dense<0.000000e+00> : vector<8x128xf32>
      %73 = vector.multi_reduction <add>, %72, %cst_33 [0] : vector<4x8x128xf32> to vector<8x128xf32>
      %74 = arith.addf %71, %73 : vector<8x128xf32>
      %c0_34 = arith.constant 0 : index
      %c1_35 = arith.constant 1 : index
      %c0_36 = arith.constant 0 : index
      %c0_37 = arith.constant 0 : index
      %75 = vector.load %arg4[%c0_34, %c1_35, %c0_36, %c0_37] : memref<1x4x8x128xf32, #tpu.memory_space<vmem>>, vector<1x1x8x128xf32>
      %76 = vector.shape_cast %75 : vector<1x1x8x128xf32> to vector<8x128xf32>
      %77 = vector.shape_cast %74 : vector<8x128xf32> to vector<1x1x8x128xf32>
      tpu.vector_store %arg4[%c0_34, %c1_35, %c0_36, %c0_37], %77 {strides = array<i32>} : memref<1x4x8x128xf32, #tpu.memory_space<vmem>>, vector<1x1x8x128xf32>,
      %c0_38 = arith.constant 0 : index
      %c2 = arith.constant 2 : index
      %c0_39 = arith.constant 0 : index
      %c0_40 = arith.constant 0 : index
      %78 = vector.load %arg4[%c0_38, %c2, %c0_39, %c0_40] : memref<1x4x8x128xf32, #tpu.memory_space<vmem>>, vector<1x1x8x128xf32>
      %79 = vector.shape_cast %78 : vector<1x1x8x128xf32> to vector<8x128xf32>
      %80 = vector.shape_cast %60 : vector<32x128xf32> to vector<4x8x128xf32>
      %cst_41 = arith.constant dense<0.000000e+00> : vector<8x128xf32>
      %81 = vector.multi_reduction <add>, %80, %cst_41 [0] : vector<4x8x128xf32> to vector<8x128xf32>
      %82 = arith.addf %79, %81 : vector<8x128xf32>
      %c0_42 = arith.constant 0 : index
      %c2_43 = arith.constant 2 : index
      %c0_44 = arith.constant 0 : index
      %c0_45 = arith.constant 0 : index
      %83 = vector.load %arg4[%c0_42, %c2_43, %c0_44, %c0_45] : memref<1x4x8x128xf32, #tpu.memory_space<vmem>>, vector<1x1x8x128xf32>
      %84 = vector.shape_cast %83 : vector<1x1x8x128xf32> to vector<8x128xf32>
      %85 = vector.shape_cast %82 : vector<8x128xf32> to vector<1x1x8x128xf32>
      tpu.vector_store %arg4[%c0_42, %c2_43, %c0_44, %c0_45], %85 {strides = array<i32>} : memref<1x4x8x128xf32, #tpu.memory_space<vmem>>, vector<1x1x8x128xf32>,
      %c0_46 = arith.constant 0 : index
      %c3 = arith.constant 3 : index
      %c0_47 = arith.constant 0 : index
      %c0_48 = arith.constant 0 : index
      %86 = vector.load %arg4[%c0_46, %c3, %c0_47, %c0_48] : memref<1x4x8x128xf32, #tpu.memory_space<vmem>>, vector<1x1x8x128xf32>
      %87 = vector.shape_cast %86 : vector<1x1x8x128xf32> to vector<8x128xf32>
      %88 = vector.shape_cast %61 : vector<32x128xf32> to vector<4x8x128xf32>
      %cst_49 = arith.constant dense<0.000000e+00> : vector<8x128xf32>
      %89 = vector.multi_reduction <add>, %88, %cst_49 [0] : vector<4x8x128xf32> to vector<8x128xf32>
      %90 = arith.addf %87, %89 : vector<8x128xf32>
      %c0_50 = arith.constant 0 : index
      %c3_51 = arith.constant 3 : index
      %c0_52 = arith.constant 0 : index
      %c0_53 = arith.constant 0 : index
      %91 = vector.load %arg4[%c0_50, %c3_51, %c0_52, %c0_53] : memref<1x4x8x128xf32, #tpu.memory_space<vmem>>, vector<1x1x8x128xf32>
      %92 = vector.shape_cast %91 : vector<1x1x8x128xf32> to vector<8x128xf32>
      %93 = vector.shape_cast %90 : vector<8x128xf32> to vector<1x1x8x128xf32>
      tpu.vector_store %arg4[%c0_50, %c3_51, %c0_52, %c0_53], %93 {strides = array<i32>} : memref<1x4x8x128xf32, #tpu.memory_space<vmem>>, vector<1x1x8x128xf32>,
    } else {
    }
    return
  }
  func.func @transform_0(%arg0: i32, %arg1: i32) -> (i32, i32) {
    %c1_i32 = arith.constant 1 : i32
    %0 = arith.muli %arg0, %c1_i32 : i32
    %1 = arith.addi %0, %arg1 : i32
    %c0_i32 = arith.constant 0 : i32
    %c0_i32_0 = arith.constant 0 : i32
    return %1, %c0_i32 : i32, i32
  }
  func.func @transform_1(%arg0: i32, %arg1: i32) -> (i32, i32) {
    %c1_i32 = arith.constant 1 : i32
    %0 = arith.muli %arg0, %c1_i32 : i32
    %1 = arith.addi %0, %arg1 : i32
    %c0_i32 = arith.constant 0 : i32
    %c0_i32_0 = arith.constant 0 : i32
    return %1, %c0_i32 : i32, i32
  }
  func.func @transform_2(%arg0: i32, %arg1: i32) -> (i32, i32, i32, i32) {
    %c0_i32 = arith.constant 0 : i32
    %c0_i32_0 = arith.constant 0 : i32
    %c0_i32_1 = arith.constant 0 : i32
    %c0_i32_2 = arith.constant 0 : i32
    return %arg0, %c0_i32, %c0_i32_0, %c0_i32_1 : i32, i32, i32, i32
  }
}

</mosaic_0001>

<bundles_post_ra>
// kernel: tpu_custom_call.1
= control target key start
LH: loop header
LB: loop body
LE: loop exit
PB: predicated region body
PF: predicated region fallthrough
CT: control target
= control target key end

     0   :  { %7 = vsyncpa [#allocation3], 0  ;;  %s424_s0 = inlined_call_operand.hbm [shape: f32[32,128], index: 0, kind: input, shape index: {}]   ;;  %s425_s1 = inlined_call_operand.hbm [shape: f32[32,128], index: 1, kind: input, shape index: {}]   ;;  %s426_s2 = inlined_call_operand.hbm [shape: f32[1,4,8,128], index: 2, kind: output, shape index: {}]  }
   0x1   :  { %8 = vsyncpa [#allocation6], 0 }
   0x2   :  { %9 = vsyncpa [#allocation4], 0  ;;  %s358_s9 = smov [#allocation2]   ;;  %s286_s13 = scalar_lea.hbm %s424_s0, 512 }
   0x3   :  { %s19_s10 = sshll.u32 %s358_s9, 4  ;;  %p287_p0 = scmp.ne.s32.totalorder %s424_s0, %s286_s13  ;;  %s20_s10 = int_to_ptr.vmem [resolvable:$true] %s19_s10 }
   0x4   :  { %p290_p1 = scmp.lt.u32.totalorder %s286_s13, %s424_s0 }
   0x6   :  { %p292_p2 = pnand %p290_p1, %p287_p0 }
   0x8   :  { %295 = shalt.err (!%p292_p2)
}
   0x9   :  { %s296_s18 = scalar_lea.vmem %s20_s10, 512  ;;  %p301_p4 = scmp.lt.s32.totalorder %s20_s10, %s20_s10 }
   0xa   :  { %p297_p3 = scmp.ne.s32.totalorder %s20_s10, %s296_s18  ;;  %p302_p5 = scmp.lt.s32.totalorder %s296_s18, %s296_s18 }
   0xc   :  { %p303_p6 = por %p302_p5, %p301_p4 }
   0xe   :  { %p304_p7 = pnand %p303_p6, %p297_p3 }
  0x10   :  { %307 = shalt.err (!%p304_p7)
}
  0x11   :  { %s359_s19 = smov 128   ;;  %s360_s20 = smov 8  }
  0x12   :  { %25 = dma.hbm_to_vmem [thread:$0]  %s424_s0, 512, %s20_s10, [#allocation3], %s359_s19, %s359_s19, %s360_s20  }
  0x13   :  { %s361_s23 = smov [#allocation5]   ;;  %s308_s27 = scalar_lea.hbm %s425_s1, 512 }
  0x14   :  { %s35_s24 = sshll.u32 %s361_s23, 4  ;;  %p309_p8 = scmp.ne.s32.totalorder %s425_s1, %s308_s27  ;;  %s36_s24 = int_to_ptr.vmem [resolvable:$true] %s35_s24 }
  0x15   :  { %p312_p9 = scmp.lt.u32.totalorder %s308_s27, %s425_s1 }
  0x17   :  { %p314_p10 = pnand %p312_p9, %p309_p8 }
  0x19   :  { %317 = shalt.err (!%p314_p10)
}
  0x1a   :  { %s318_s4 = scalar_lea.vmem %s36_s24, 512  ;;  %p323_p12 = scmp.lt.s32.totalorder %s36_s24, %s36_s24 }
  0x1b   :  { %p319_p11 = scmp.ne.s32.totalorder %s36_s24, %s318_s4  ;;  %p324_p13 = scmp.lt.s32.totalorder %s318_s4, %s318_s4 }
  0x1d   :  { %p325_p0 = por %p324_p13, %p323_p12 }
  0x1f   :  { %p326_p1 = pnand %p325_p0, %p319_p11 }
  0x21   :  { %329 = shalt.err (!%p326_p1)
}
  0x22   :  { %41 = dma.hbm_to_vmem [thread:$0]  %s425_s1, 512, %s36_s24, [#allocation6], %s359_s19, %s359_s19, %s360_s20  }
  0x23   :  { %352 = dma.done.wait [#allocation3], 512  }
  0x24   :  { %353 = vsyncadd [#allocation3], 4294966784 }
  0x25   :  { %354 = dma.done.wait [#allocation6], 512  }
  0x26   :  { %355 = vsyncadd [#allocation6], 4294966784  ;;  %v64_v0 = vld [vmem:[#allocation5] sm:$0xff]  ;;  %v65_v1 = vld [vmem:[#allocation5 + $0x8] sm:$0xff]  ;;  %v362_v4 = vmov 0.0   ;;  %s363_s1 = smov [#allocation7]  }
  0x27   :  { %vm72_vm0 = vcmp.eq.f32.partialorder %v64_v0, 0.0  ;;  %vm73_vm1 = vcmp.eq.f32.partialorder %v65_v1, 0.0  ;;  %vm68_vm2 = vcmp.eq.f32.partialorder %v64_v0, 1.0  ;;  %vm69_vm3 = vcmp.eq.f32.partialorder %v65_v1, 1.0  ;;  %v60_v7 = vld [vmem:[#allocation2] sm:$0xff]  ;;  %v61_v12 = vld [vmem:[#allocation2 + $0x8] sm:$0xff] }
  0x28   :  { %v80_v2 = vsel %vm72_vm0, 1.0, %v64_v0  ;;  %v81_v3 = vsel %vm73_vm1, 1.0, %v65_v1  ;;  %v272_v5 = vsel %vm72_vm0, 1.0, %v362_v4  ;;  %v273_v6 = vsel %vm73_vm1, 1.0, %v362_v4  ;;  %s259_s6 = sshll.u32 %s363_s1, 4  ;;  %s260_s6 = int_to_ptr.vmem [resolvable:$true] %s259_s6 }
  0x29   :  { %v228_v8 = vadd.f32 %v273_v6, %v272_v5  ;;  %v84_v9 = vsel %vm68_vm2, -1.0, %v80_v2  ;;  %v85_v10 = vsel %vm69_vm3, -1.0, %v81_v3  ;;  %v276_v11 = vsel %vm68_vm2, 1.0, %v362_v4  ;;  %s330_s7 = scalar_lea.vmem %s260_s6, 512  ;;  %p335_p3 = scmp.lt.s32.totalorder %s260_s6, %s260_s6 }
  0x2a   :  { %v277_v13 = vsel %vm69_vm3, 1.0, %v362_v4  ;;  %v108_v14 = vadd.f32 1.0, %v84_v9  ;;  %v109_v15 = vadd.f32 1.0, %v85_v10  ;;  %vm76_vm4 = vcmp.eq.f32.partialorder %v64_v0, 255.0  ;;  %p331_p2 = scmp.ne.s32.totalorder %s260_s6, %s330_s7  ;;  %p336_p4 = scmp.lt.s32.totalorder %s330_s7, %s330_s7 }
  0x2b   :  { %v235_v16 = vadd.f32 %v277_v13, %v276_v11  ;;  %vm77_vm5 = vcmp.eq.f32.partialorder %v65_v1, 255.0  ;;  %v88_v17 = vsel %vm76_vm4, 0.0, %v60_v7  ;;  %232 = vst [vmem:[#allocation7] sm:$0xff] %v228_v8 }
  0x2c   :  { %v112_v18 = vmul.f32 0.5, %v108_v14  ;;  %v113_v19 = vmul.f32 0.5, %v109_v15  ;;  %v89_v20 = vsel %vm77_vm5, 0.0, %v61_v12  ;;  %v124_v21 = vmul.f32 %v88_v17, %v88_v17  ;;  %p337_p5 = por %p336_p4, %p335_p3 }
  0x2d   :  { %v125_v22 = vmul.f32 %v89_v20, %v89_v20  ;;  %v116_v23 = vsub.f32 2.0, %v88_v17  ;;  %v117_v24 = vsub.f32 2.0, %v89_v20  ;;  %239 = vst [vmem:[#allocation7 + $0x8] sm:$0xff] %v235_v16 }
  0x2e   :  { %v128_v25 = vmul.f32 %v124_v21, %v112_v18  ;;  %v132_v26 = vsub.f32 1.0, %v112_v18  ;;  %v133_v30 = vsub.f32 1.0, %v113_v19  ;;  %p338_p6 = pnand %p337_p5, %p331_p2 }
  0x2f   :  { %v129_v27 = vmul.f32 %v125_v22, %v113_v19  ;;  %v120_v28 = vmax.f32 %v116_v23, 0.0  ;;  %v121_v29 = vmax.f32 %v117_v24, 0.0 }
  0x31   :  { %v242_v31 = vadd.f32 %v129_v27, %v128_v25  ;;  %v136_v32 = vmul.f32 %v120_v28, %v120_v28  ;;  %v137_v33 = vmul.f32 %v121_v29, %v121_v29 }
  0x33   :  { %v140_v34 = vmul.f32 %v136_v32, %v132_v26  ;;  %v141_v35 = vmul.f32 %v137_v33, %v133_v30  ;;  %246 = vst [vmem:[#allocation7 + $0x10] sm:$0xff] %v242_v31 }
  0x35   :  { %v249_v36 = vadd.f32 %v141_v35, %v140_v34 }
  0x37   :  { %253 = vst [vmem:[#allocation7 + $0x18] sm:$0xff] %v249_v36 }
  0x38   :  { %341 = shalt.err (!%p338_p6)
}
  0x39   :  { %s342_s10 = scalar_lea.hbm %s426_s2, 512 }
  0x3a   :  { %p343_p7 = scmp.ne.s32.totalorder %s426_s2, %s342_s10  ;;  %p346_p8 = scmp.lt.u32.totalorder %s342_s10, %s426_s2 }
  0x3c   :  { %p348_p9 = pnand %p346_p8, %p343_p7 }
  0x3e   :  { %351 = shalt.err (!%p348_p9)
}
  0x3f   :  { %265 = dma.vmem_to_hbm [thread:$0]  %s260_s6, 512, %s426_s2, [#allocation4], %s359_s19, %s359_s19, %s360_s20  }
  0x40   :  { %356 = dma.done.wait [#allocation4], 512  }
  0x41   :  { %357 = vsyncadd [#allocation4], 4294966784 }
  0x42   :  { %269 = vsyncpa [#allocation3], 1 }
  0x43   :  { %270 = vsyncpa [#allocation6], 1 }
  0x44   :  { %271 = vsyncpa [#allocation4], 1 }

</bundles_post_ra>
